<compile_context>
chip_gen: v7x
topology: tpu7x:2x2x1
jax: 0.10.0
libtpu: 0.0.40
codegen_flags: <defaults>
</compile_context>

<pallas_src>
import jax
import jax.numpy as jnp
from jax.experimental import pallas as pl
from jax.experimental.pallas import tpu as pltpu

TILE_BYTES_PER_INPUT = 4 << 20     # ~4 MiB f32 per input per grid step
VMEM_LIMIT_BYTES = 32 << 20        # explicit scoped-VMEM limit (v5e default is 16 MiB)
MIN_KERNEL_ELEMS = 1 << 15         # below this, fused XLA elementwise+reduce wins
_SUBLANE_ALIGN = 32                # covers f32(8) / bf16(16) / int8(32) min sublane tiles


def _num_parallel_chunks():
    """2 on v7x (2 TensorCores/chip), 1 on single-TC generations (v5e/v6e)."""
    try:
        kind = jax.devices()[0].device_kind.lower()
    except Exception:
        return 1
    return 2 if ("v7" in kind or "tpu7" in kind) else 1


def _bce_sum(x, y):
    """Fused jnp sum of stable BCE-with-logits losses (fast path / tails)."""
    x = x.astype(jnp.float32)
    y = y.astype(jnp.float32)
    return jnp.sum(jnp.maximum(x, 0.0) - x * y + jnp.log1p(jnp.exp(-jnp.abs(x))))


def _bce_partial_kernel(x_ref, y_ref, out_ref):
    """Accumulate per-step BCE-with-logits loss sums into an (8, lane_w) block."""
    x = x_ref[...].astype(jnp.float32)
    y = y_ref[...].astype(jnp.float32)
    # Numerically stable BCE with logits (same formula PyTorch uses):
    #   max(x, 0) - x*y + log1p(exp(-|x|))
    loss = jnp.maximum(x, 0.0) - x * y + jnp.log1p(jnp.exp(-jnp.abs(x)))
    # Sublane-aligned VALU reduction of the work tile to (8, lane_w): pure
    # vreg-to-vreg adds, no XLU, tiny resident accumulator.
    partial = loss.reshape(-1, 8, loss.shape[1]).sum(axis=0)

    @pl.when(pl.program_id(1) == 0)
    def _():
        out_ref[...] = partial

    @pl.when(pl.program_id(1) != 0)
    def _():
        out_ref[...] += partial


def _tile_plan(rows, lane_w):
    """Pick (chunks, tile_rows, steps) for the bulk grid; None -> no kernel bulk."""
    budget_rows = (TILE_BYTES_PER_INPUT // (lane_w * 4)) // _SUBLANE_ALIGN * _SUBLANE_ALIGN
    budget_rows = max(_SUBLANE_ALIGN, budget_rows)
    chunks = _num_parallel_chunks()
    tile_rows = min(budget_rows, (rows // chunks // _SUBLANE_ALIGN) * _SUBLANE_ALIGN)
    if tile_rows == 0 and chunks > 1:
        chunks = 1
        tile_rows = min(budget_rows, (rows // _SUBLANE_ALIGN) * _SUBLANE_ALIGN)
    if tile_rows == 0:
        return None
    steps = rows // (chunks * tile_rows)
    return chunks, tile_rows, steps


def bce_with_logits_loss(y_pred, y_true):
    """Mean-reduced binary cross entropy with logits (== nn.BCEWithLogitsLoss())."""
    assert y_pred.shape == y_true.shape
    n = y_pred.size
    denom = jnp.asarray(n, jnp.float32)

    # Whole-array reshapes are free (bitcast); no wrapper-side dtype cast.
    xf = y_pred.reshape(-1)
    yf = y_true.reshape(-1)

    # Small-n fast path: launch overhead dominates; let XLA fuse it.
    if n < MIN_KERNEL_ELEMS:
        return _bce_sum(xf, yf) / denom

    # Pick the widest lane width that divides n so the 2-D reshape is free
    # (no prefix slice / pad copy of the inputs).
    lane_w = None
    for w in (512, 256, 128):
        if n % w == 0:
            lane_w = w
            break
    if lane_w is None:
        # Ragged n: a lane-aligned kernel input would need a full prefix copy
        # (an extra HBM pass over both inputs) — the fused jnp path is cheaper.
        return _bce_sum(xf, yf) / denom

    rows = n // lane_w
    plan = _tile_plan(rows, lane_w)
    if plan is None:
        return _bce_sum(xf, yf) / denom
    chunks, tile_rows, steps = plan
    rows_bulk = chunks * tile_rows * steps

    x2 = xf.reshape(rows, lane_w)   # free
    y2 = yf.reshape(rows, lane_w)   # free

    in_spec = pl.BlockSpec((tile_rows, lane_w), lambda c, i: (c * steps + i, 0))
    out_spec = pl.BlockSpec((8, lane_w), lambda c, i: (c, 0))

    partial = pl.pallas_call(
        _bce_partial_kernel,
        out_shape=jax.ShapeDtypeStruct((chunks * 8, lane_w), jnp.float32),
        grid_spec=pltpu.PrefetchScalarGridSpec(
            num_scalar_prefetch=0,
            grid=(chunks, steps),
            in_specs=[in_spec, in_spec],
            out_specs=out_spec,
        ),
        compiler_params=pltpu.CompilerParams(
            dimension_semantics=("parallel", "arbitrary"),
            vmem_limit_bytes=VMEM_LIMIT_BYTES,
        ),
    )(x2, y2)

    total = jnp.sum(partial)  # tiny (<= 64 KiB) cross-lane/sublane reduction

    # Row tail (< one chunk of rows): single fused XLA pass, exact formula.
    if rows_bulk < rows:
        total = total + _bce_sum(x2[rows_bulk:], y2[rows_bulk:])

    return total / denom


if __name__ == "__main__":
    key = jax.random.PRNGKey(0)

    def _ref(x, y):
        x = x.astype(jnp.float32)
        y = y.astype(jnp.float32)
        return jnp.mean(jnp.maximum(x, 0.0) - x * y + jnp.log1p(jnp.exp(-jnp.abs(x))))

    shapes = [
        (2, 4, 16, 16),    # module-sized demo (small-n fast path)
        (2, 4, 64, 64),    # tile-aligned bulk -> Pallas kernel, no tail
        (2, 4, 24, 176),   # Pallas kernel bulk + fused jnp row tail
    ]
    for idx, shape in enumerate(shapes):
        k1, k2 = jax.random.split(jax.random.fold_in(key, idx))
        y_pred = jax.random.normal(k1, shape, dtype=jnp.float32)
        y_true = (jax.random.uniform(k2, shape) > 0.5).astype(jnp.float32)

        loss = bce_with_logits_loss(y_pred, y_true)
        jax.block_until_ready(loss)

        ref = _ref(y_pred, y_true)
        assert jnp.allclose(loss, ref, rtol=1e-5, atol=1e-6), (shape, loss, ref)

    print("KERNEL_OK")
</pallas_src>

<mosaic_0001>
module attributes {stable_mosaic.version = 11 : i64} {
  func.func @_bce_partial_kernel(%arg0: i32, %arg1: i32, %arg2: memref<64x512xf32, #tpu.memory_space<vmem>>, %arg3: memref<64x512xf32, #tpu.memory_space<vmem>>, %arg4: memref<8x512xf32, #tpu.memory_space<vmem>>) attributes {dimension_semantics = [#tpu.dimension_semantics<parallel>, #tpu.dimension_semantics<arbitrary>], iteration_bounds = array<i64: 1, 1>, scalar_prefetch = 0 : i64, scratch_operands = 0 : i64, tpu.core_type = #tpu.core_type<tc>, window_params = [{transform_indices = @transform_0, window_bounds = array<i64: 64, 512>}, {transform_indices = @transform_1, window_bounds = array<i64: 64, 512>}, {transform_indices = @transform_2, window_bounds = array<i64: 8, 512>}]} {
    %c0 = arith.constant 0 : index
    %c0_0 = arith.constant 0 : index
    %0 = vector.load %arg2[%c0, %c0_0] : memref<64x512xf32, #tpu.memory_space<vmem>>, vector<64x512xf32>
    %c0_1 = arith.constant 0 : index
    %c0_2 = arith.constant 0 : index
    %1 = vector.load %arg3[%c0_1, %c0_2] : memref<64x512xf32, #tpu.memory_space<vmem>>, vector<64x512xf32>
    %cst = arith.constant 0.000000e+00 : f32
    %2 = vector.broadcast %cst : f32 to vector<64x512xf32>
    %3 = arith.maximumf %0, %2 : vector<64x512xf32>
    %4 = arith.mulf %0, %1 : vector<64x512xf32>
    %5 = arith.subf %3, %4 : vector<64x512xf32>
    %6 = math.absf %0 : vector<64x512xf32>
    %cst_3 = arith.constant 0.000000e+00 : f32
    %7 = vector.broadcast %cst_3 : f32 to vector<64x512xf32>
    %8 = arith.subf %7, %6 : vector<64x512xf32>
    %9 = math.exp %8 : vector<64x512xf32>
    %10 = math.log1p %9 : vector<64x512xf32>
    %11 = arith.addf %5, %10 : vector<64x512xf32>
    %12 = vector.shape_cast %11 : vector<64x512xf32> to vector<8x8x512xf32>
    %cst_4 = arith.constant dense<0.000000e+00> : vector<8x512xf32>
    %13 = vector.multi_reduction <add>, %12, %cst_4 [0] : vector<8x8x512xf32> to vector<8x512xf32>
    %c0_i32 = arith.constant 0 : i32
    %14 = arith.cmpi eq, %arg1, %c0_i32 : i32
    %15 = arith.extui %14 : i1 to i32
    %c0_i32_5 = arith.constant 0 : i32
    %16 = arith.cmpi ne, %15, %c0_i32_5 : i32
    scf.if %16 {
      %c0_8 = arith.constant 0 : index
      %c0_9 = arith.constant 0 : index
      %20 = vector.load %arg4[%c0_8, %c0_9] : memref<8x512xf32, #tpu.memory_space<vmem>>, vector<8x512xf32>
      tpu.vector_store %arg4[%c0_8, %c0_9], %13 {strides = array<i32>} : memref<8x512xf32, #tpu.memory_space<vmem>>, vector<8x512xf32>,
    } else {
    }
    %c0_i32_6 = arith.constant 0 : i32
    %17 = arith.cmpi ne, %arg1, %c0_i32_6 : i32
    %18 = arith.extui %17 : i1 to i32
    %c0_i32_7 = arith.constant 0 : i32
    %19 = arith.cmpi ne, %18, %c0_i32_7 : i32
    scf.if %19 {
      %c0_8 = arith.constant 0 : index
      %c0_9 = arith.constant 0 : index
      %20 = vector.load %arg4[%c0_8, %c0_9] : memref<8x512xf32, #tpu.memory_space<vmem>>, vector<8x512xf32>
      %21 = arith.addf %20, %13 : vector<8x512xf32>
      %c0_10 = arith.constant 0 : index
      %c0_11 = arith.constant 0 : index
      %22 = vector.load %arg4[%c0_10, %c0_11] : memref<8x512xf32, #tpu.memory_space<vmem>>, vector<8x512xf32>
      tpu.vector_store %arg4[%c0_10, %c0_11], %21 {strides = array<i32>} : memref<8x512xf32, #tpu.memory_space<vmem>>, vector<8x512xf32>,
    } else {
    }
    return
  }
  func.func @transform_0(%arg0: i32, %arg1: i32) -> (i32, i32) {
    %c1_i32 = arith.constant 1 : i32
    %0 = arith.muli %arg0, %c1_i32 : i32
    %1 = arith.addi %0, %arg1 : i32
    %c0_i32 = arith.constant 0 : i32
    %c0_i32_0 = arith.constant 0 : i32
    return %1, %c0_i32 : i32, i32
  }
  func.func @transform_1(%arg0: i32, %arg1: i32) -> (i32, i32) {
    %c1_i32 = arith.constant 1 : i32
    %0 = arith.muli %arg0, %c1_i32 : i32
    %1 = arith.addi %0, %arg1 : i32
    %c0_i32 = arith.constant 0 : i32
    %c0_i32_0 = arith.constant 0 : i32
    return %1, %c0_i32 : i32, i32
  }
  func.func @transform_2(%arg0: i32, %arg1: i32) -> (i32, i32) {
    %c0_i32 = arith.constant 0 : i32
    %c0_i32_0 = arith.constant 0 : i32
    return %arg0, %c0_i32 : i32, i32
  }
}

</mosaic_0001>

<bundles_post_ra>
// kernel: tpu_custom_call.1
= control target key start
LH: loop header
LB: loop body
LE: loop exit
PB: predicated region body
PF: predicated region fallthrough
CT: control target
= control target key end

     0   :  { %7 = vsyncpa [#allocation3], 0  ;;  %s2003_s0 = inlined_call_operand.hbm [shape: f32[64,512], index: 0, kind: input, shape index: {}]   ;;  %s2004_s1 = inlined_call_operand.hbm [shape: f32[64,512], index: 1, kind: input, shape index: {}]   ;;  %s2005_s2 = inlined_call_operand.hbm [shape: f32[8,512], index: 2, kind: output, shape index: {}]  }
   0x1   :  { %8 = vsyncpa [#allocation6], 0 }
   0x2   :  { %9 = vsyncpa [#allocation4], 0  ;;  %s935_s9 = smov [#allocation2]   ;;  %s863_s13 = scalar_lea.hbm %s2003_s0, 4096 }
   0x3   :  { %s20_s10 = sshll.u32 %s935_s9, 4  ;;  %p864_p0 = scmp.ne.s32.totalorder %s2003_s0, %s863_s13  ;;  %s21_s10 = int_to_ptr.vmem [resolvable:$true] %s20_s10 }
   0x4   :  { %p867_p1 = scmp.lt.u32.totalorder %s863_s13, %s2003_s0 }
   0x6   :  { %p869_p2 = pnand %p867_p1, %p864_p0 }
   0x8   :  { %872 = shalt.err (!%p869_p2)
}
   0x9   :  { %s873_s18 = scalar_lea.vmem %s21_s10, 4096  ;;  %p878_p4 = scmp.lt.s32.totalorder %s21_s10, %s21_s10 }
   0xa   :  { %p874_p3 = scmp.ne.s32.totalorder %s21_s10, %s873_s18  ;;  %p879_p5 = scmp.lt.s32.totalorder %s873_s18, %s873_s18 }
   0xc   :  { %p880_p6 = por %p879_p5, %p878_p4 }
   0xe   :  { %p881_p7 = pnand %p880_p6, %p874_p3 }
  0x10   :  { %884 = shalt.err (!%p881_p7)
}
  0x11   :  { %s936_s19 = smov 512   ;;  %s937_s20 = smov 32  }
  0x12   :  { %26 = dma.hbm_to_vmem [thread:$0]  %s2003_s0, 4096, %s21_s10, [#allocation3], %s936_s19, %s936_s19, %s937_s20  }
  0x13   :  { %s938_s23 = smov [#allocation5]   ;;  %s885_s27 = scalar_lea.hbm %s2004_s1, 4096 }
  0x14   :  { %s37_s24 = sshll.u32 %s938_s23, 4  ;;  %p886_p8 = scmp.ne.s32.totalorder %s2004_s1, %s885_s27  ;;  %s38_s24 = int_to_ptr.vmem [resolvable:$true] %s37_s24 }
  0x15   :  { %p889_p9 = scmp.lt.u32.totalorder %s885_s27, %s2004_s1 }
  0x17   :  { %p891_p10 = pnand %p889_p9, %p886_p8 }
  0x19   :  { %894 = shalt.err (!%p891_p10)
}
  0x1a   :  { %s895_s4 = scalar_lea.vmem %s38_s24, 4096  ;;  %p900_p12 = scmp.lt.s32.totalorder %s38_s24, %s38_s24 }
  0x1b   :  { %p896_p11 = scmp.ne.s32.totalorder %s38_s24, %s895_s4  ;;  %p901_p13 = scmp.lt.s32.totalorder %s895_s4, %s895_s4 }
  0x1d   :  { %p902_p0 = por %p901_p13, %p900_p12 }
  0x1f   :  { %p903_p1 = pnand %p902_p0, %p896_p11 }
  0x21   :  { %906 = shalt.err (!%p903_p1)
}
  0x22   :  { %43 = dma.hbm_to_vmem [thread:$0]  %s2004_s1, 4096, %s38_s24, [#allocation6], %s936_s19, %s936_s19, %s937_s20  }
  0x23   :  { %929 = dma.done.wait [#allocation3], 4096  }
  0x24   :  { %930 = vsyncadd [#allocation3], 4294963200 }
  0x25   :  { %931 = dma.done.wait [#allocation6], 4096  }
  0x26   :  { %932 = vsyncadd [#allocation6], 4294963200  ;;  %v979_v0 = vld [vmem:[#allocation2] sm:$0xff]  ;;  %v981_v1 = vld [vmem:[#allocation2 + $0x8] sm:$0xff]  ;;  %s939_s1 = smov [#allocation7]  }
  0x27   :  { %2071 = vst [vmem:[#allocation11_spill] sm:$0xff] %v979_v0  ;;  %2072 = vst [vmem:[#allocation12_spill] sm:$0xff] %v981_v1  ;;  %v983_v2 = vld [vmem:[#allocation2 + $0x10] sm:$0xff]  ;;  %v985_v3 = vld [vmem:[#allocation2 + $0x18] sm:$0xff]  ;;  %v118_v11 = vmax.f32 %v979_v0, 0.0  ;;  %v119_v12 = vmax.f32 %v981_v1, 0.0 }
  0x28   :  { %2073 = vst [vmem:[#allocation13_spill] sm:$0xff] %v983_v2  ;;  %2074 = vst [vmem:[#allocation14_spill] sm:$0xff] %v985_v3  ;;  %v987_v4 = vld [vmem:[#allocation2 + $0x20] sm:$0xff]  ;;  %v989_v5 = vld [vmem:[#allocation2 + $0x28] sm:$0xff]  ;;  %s720_s6 = sshll.u32 %s939_s1, 4  ;;  %s721_s6 = int_to_ptr.vmem [resolvable:$true] %s720_s6 }
  0x29   :  { %v991_v6 = vld [vmem:[#allocation2 + $0x30] sm:$0xff]  ;;  %v993_v7 = vld [vmem:[#allocation2 + $0x38] sm:$0xff]  ;;  %v995_v8 = vld [vmem:[#allocation2 + $0x40] sm:$0xff]  ;;  %s907_s7 = scalar_lea.vmem %s721_s6, 512  ;;  %p912_p3 = scmp.lt.s32.totalorder %s721_s6, %s721_s6 }
  0x2a   :  { %v997_v9 = vld [vmem:[#allocation2 + $0x48] sm:$0xff]  ;;  %v999_v10 = vld [vmem:[#allocation2 + $0x50] sm:$0xff]  ;;  %v1003_v13 = vld [vmem:[#allocation2 + $0x58] sm:$0xff]  ;;  %p908_p2 = scmp.ne.s32.totalorder %s721_s6, %s907_s7  ;;  %p913_p4 = scmp.lt.s32.totalorder %s907_s7, %s907_s7 }
  0x2b   :  { %v1005_v14 = vld [vmem:[#allocation2 + $0x60] sm:$0xff]  ;;  %v1007_v15 = vld [vmem:[#allocation2 + $0x68] sm:$0xff]  ;;  %v1012_v19 = vld [vmem:[#allocation2 + $0x70] sm:$0xff] }
  0x2c   :  { %2075 = vst [vmem:[#allocation15_spill] sm:$0xff] %v1007_v15  ;;  %v1014_v20 = vld [vmem:[#allocation2 + $0x78] sm:$0xff]  ;;  %v1016_v21 = vld [vmem:[#allocation2 + $0x80] sm:$0xff]  ;;  %v1021_v25 = vld [vmem:[#allocation2 + $0x88] sm:$0xff]  ;;  %p914_p5 = por %p913_p4, %p912_p3 }
  0x2d   :  { %2076 = vst [vmem:[#allocation16_spill] sm:$0xff] %v1016_v21  ;;  %v1023_v26 = vld [vmem:[#allocation2 + $0x90] sm:$0xff]  ;;  %v1025_v27 = vld [vmem:[#allocation2 + $0x98] sm:$0xff]  ;;  %v1030_v31 = vld [vmem:[#allocation2 + $0xa0] sm:$0xff] }
  0x2e   :  { %v1032_v32 = vld [vmem:[#allocation2 + $0xa8] sm:$0xff]  ;;  %v1034_v33 = vld [vmem:[#allocation2 + $0xb0] sm:$0xff]  ;;  %v1039_v37 = vld [vmem:[#allocation2 + $0xb8] sm:$0xff]  ;;  %p915_p6 = pnand %p914_p5, %p908_p2 }
  0x2f   :  { %v1041_v38 = vld [vmem:[#allocation2 + $0xc0] sm:$0xff]  ;;  %v1043_v39 = vld [vmem:[#allocation2 + $0xc8] sm:$0xff]  ;;  %v1048_v44 = vld [vmem:[#allocation2 + $0xd0] sm:$0xff] }
  0x30   :  { %v86_v40 = vld [vmem:[#allocation5] sm:$0xff]  ;;  %v1050_v45 = vld [vmem:[#allocation2 + $0xd8] sm:$0xff]  ;;  %v87_v47 = vld [vmem:[#allocation5 + $0x8] sm:$0xff] }
  0x31   :  { %v1052_v46 = vld [vmem:[#allocation2 + $0xe0] sm:$0xff]  ;;  %v1057_v51 = vld [vmem:[#allocation2 + $0xe8] sm:$0xff]  ;;  %v1059_v52 = vld [vmem:[#allocation2 + $0xf0] sm:$0xff]  ;;  %v150_v50 = vmul.f32 %v86_v40, %v979_v0  ;;  %v151_v42 = vmul.f32 %v87_v47, %v981_v1 }
  0x32   :  { %v1061_v53 = vld [vmem:[#allocation2 + $0xf8] sm:$0xff]  ;;  %v88_v54 = vld [vmem:[#allocation5 + $0x10] sm:$0xff]  ;;  %v90_v59 = vld [vmem:[#allocation5 + $0x20] sm:$0xff] }
  0x33   :  { %v89_v58 = vld [vmem:[#allocation5 + $0x18] sm:$0xff]  ;;  %v91_v60 = vld [vmem:[#allocation5 + $0x28] sm:$0xff]  ;;  %v92_v49 = vld [vmem:[#allocation5 + $0x30] sm:$0xff]  ;;  %v152_v35 = vmul.f32 %v88_v54, %v983_v2  ;;  %v154_v57 = vmul.f32 %v90_v59, %v987_v4  ;;  %v1087_v23 = vsub.f32 %v118_v11, %v150_v50 }
  0x34   :  { %v93_v48 = vld [vmem:[#allocation5 + $0x38] sm:$0xff]  ;;  %v94_v43 = vld [vmem:[#allocation5 + $0x40] sm:$0xff]  ;;  %v95_v41 = vld [vmem:[#allocation5 + $0x48] sm:$0xff]  ;;  %v153_v56 = vmul.f32 %v89_v58, %v985_v3  ;;  %v155_v47 = vmul.f32 %v91_v60, %v989_v5  ;;  %v156_v63 = vmul.f32 %v92_v49, %v991_v6  ;;  %v1094_v49 = vsub.f32 %v119_v12, %v151_v42 }
  0x35   :  { %v96_v36 = vld [vmem:[#allocation5 + $0x50] sm:$0xff]  ;;  %v97_v61 = vld [vmem:[#allocation5 + $0x58] sm:$0xff]  ;;  %v98_v34 = vld [vmem:[#allocation5 + $0x60] sm:$0xff]  ;;  %v157_v40 = vmul.f32 %v93_v48, %v993_v7  ;;  %v158_v54 = vmul.f32 %v94_v43, %v995_v8  ;;  %2077 = vst [vmem:[#allocation17_spill] sm:$0xff] %v1087_v23  ;;  %v159_v60 = vmul.f32 %v95_v41, %v997_v9  ;;  %v2079_v23 = vmax.f32 %v983_v2, 0.0 }
  0x36   :  { %v99_v30 = vld [vmem:[#allocation5 + $0x68] sm:$0xff]  ;;  %v100_v55 = vld [vmem:[#allocation5 + $0x70] sm:$0xff]  ;;  %v101_v28 = vld [vmem:[#allocation5 + $0x78] sm:$0xff]  ;;  %v160_v29 = vmul.f32 %v96_v36, %v999_v10  ;;  %v161_v18 = vmul.f32 %v97_v61, %v1003_v13  ;;  %2078 = vst [vmem:[#allocation18_spill] sm:$0xff] %v1094_v49  ;;  %v162_v16 = vmul.f32 %v98_v34, %v1005_v14  ;;  %v2081_v49 = vmax.f32 %v985_v3, 0.0 }
  0x37   :  { %v102_v24 = vld [vmem:[#allocation5 + $0x80] sm:$0xff]  ;;  %v103_v62 = vld [vmem:[#allocation5 + $0x88] sm:$0xff]  ;;  %v104_v58 = vld [vmem:[#allocation5 + $0x90] sm:$0xff]  ;;  %v163_v11 = vmul.f32 %v99_v30, %v1007_v15  ;;  %v164_v50 = vmul.f32 %v100_v55, %v1012_v19  ;;  %v1101_v41 = vsub.f32 %v2079_v23, %v152_v35  ;;  %v165_v1 = vmul.f32 %v101_v28, %v1014_v20 }
  0x38   :  { %v105_v22 = vld [vmem:[#allocation5 + $0x98] sm:$0xff]  ;;  %v106_v59 = vld [vmem:[#allocation5 + $0xa0] sm:$0xff]  ;;  %v107_v48 = vld [vmem:[#allocation5 + $0xa8] sm:$0xff]  ;;  %v166_v12 = vmul.f32 %v102_v24, %v1016_v21  ;;  %v167_v42 = vmul.f32 %v103_v62, %v1021_v25  ;;  %v1108_v34 = vsub.f32 %v2081_v49, %v153_v56  ;;  %v168_v2 = vmul.f32 %v104_v58, %v1023_v26 }
  0x39   :  { %v108_v17 = vld [vmem:[#allocation5 + $0xb0] sm:$0xff]  ;;  %v109_v43 = vld [vmem:[#allocation5 + $0xb8] sm:$0xff]  ;;  %2080 = vst [vmem:[#allocation19_spill] sm:$0xff] %v1101_v41  ;;  %v110_v36 = vld [vmem:[#allocation5 + $0xc0] sm:$0xff]  ;;  %v169_v23 = vmul.f32 %v105_v22, %v1025_v27  ;;  %v170_v35 = vmul.f32 %v106_v59, %v1030_v31  ;;  %v2083_v41 = vmax.f32 %v987_v4, 0.0  ;;  %v171_v62 = vmul.f32 %v107_v48, %v1032_v32 }
  0x3a   :  { %v111_v0 = vld [vmem:[#allocation5 + $0xc8] sm:$0xff]  ;;  %v112_v61 = vld [vmem:[#allocation5 + $0xd0] sm:$0xff]  ;;  %2082 = vst [vmem:[#allocation20_spill] sm:$0xff] %v1108_v34  ;;  %v113_v30 = vld [vmem:[#allocation5 + $0xd8] sm:$0xff]  ;;  %v172_v56 = vmul.f32 %v108_v17, %v1034_v33  ;;  %v173_v49 = vmul.f32 %v109_v43, %v1039_v37  ;;  %v2085_v34 = vmax.f32 %v989_v5, 0.0  ;;  %v174_v22 = vmul.f32 %v110_v36, %v1041_v38 }
  0x3b   :  { %v114_v15 = vld [vmem:[#allocation5 + $0xe0] sm:$0xff]  ;;  %v115_v55 = vld [vmem:[#allocation5 + $0xe8] sm:$0xff]  ;;  %v1115_v28 = vsub.f32 %v2083_v41, %v154_v57  ;;  %v116_v24 = vld [vmem:[#allocation5 + $0xf0] sm:$0xff]  ;;  %v175_v58 = vmul.f32 %v111_v0, %v1043_v39  ;;  %v176_v59 = vmul.f32 %v112_v61, %v1048_v44  ;;  %v2087_v57 = vmax.f32 %v991_v6, 0.0 }
  0x3c   :  { %v117_v21 = vld [vmem:[#allocation5 + $0xf8] sm:$0xff]  ;;  %v1122_v3 = vsub.f32 %v2085_v34, %v155_v47  ;;  %v177_v48 = vmul.f32 %v113_v30, %v1050_v45  ;;  %v178_v17 = vmul.f32 %v114_v15, %v1052_v46  ;;  %v179_v43 = vmul.f32 %v115_v55, %v1057_v51 }
  0x3d   :  { %2084 = vst [vmem:[#allocation21_spill] sm:$0xff] %v1115_v28  ;;  %v1129_v41 = vsub.f32 %v2087_v57, %v156_v63  ;;  %v2089_v28 = vmax.f32 %v993_v7, 0.0  ;;  %v180_v36 = vmul.f32 %v116_v24, %v1059_v52  ;;  %v181_v0 = vmul.f32 %v117_v21, %v1061_v53  ;;  %v2101_v21 = vld [vmem:[#allocation15_spill] sm:$0xff] }
  0x3e   :  { %2086 = vst [vmem:[#allocation22_spill] sm:$0xff] %v1122_v3  ;;  %v2091_v61 = vmax.f32 %v995_v8, 0.0  ;;  %v2093_v63 = vmax.f32 %v997_v9, 0.0  ;;  %v2095_v15 = vmax.f32 %v999_v10, 0.0  ;;  %v2097_v55 = vmax.f32 %v1003_v13, 0.0 }
  0x3f   :  { %2088 = vst [vmem:[#allocation23_spill] sm:$0xff] %v1129_v41  ;;  %v1136_v47 = vsub.f32 %v2089_v28, %v157_v40  ;;  %v2099_v28 = vmax.f32 %v1005_v14, 0.0 }
  0x40   :  { %v1142_v34 = vsub.f32 %v2091_v61, %v158_v54  ;;  %v1146_v57 = vsub.f32 %v2093_v63, %v159_v60  ;;  %v1150_v30 = vsub.f32 %v2095_v15, %v160_v29  ;;  %v1154_v40 = vsub.f32 %v2097_v55, %v161_v18  ;;  %v2108_v15 = vld [vmem:[#allocation16_spill] sm:$0xff] }
  0x41   :  { %2090 = vst [vmem:[#allocation24_spill] sm:$0xff] %v1136_v47  ;;  %v1158_v24 = vsub.f32 %v2099_v28, %v162_v16  ;;  %v2102_v47 = vmax.f32 %v2101_v21, 0.0  ;;  %v2104_v61 = vmax.f32 %v1012_v19, 0.0  ;;  %v2106_v63 = vmax.f32 %v1014_v20, 0.0 }
  0x42   :  { %2092 = vst [vmem:[#allocation25_spill] sm:$0xff] %v1142_v34  ;;  %2094 = vst [vmem:[#allocation26_spill] sm:$0xff] %v1146_v57  ;;  %v2111_v55 = vmax.f32 %v1021_v25, 0.0  ;;  %v2113_v28 = vmax.f32 %v1023_v26, 0.0  ;;  %v2175_v34 = vmov 0 }
  0x43   :  { %2096 = vst [vmem:[#allocation27_spill] sm:$0xff] %v1150_v30  ;;  %2098 = vst [vmem:[#allocation28_spill] sm:$0xff] %v1154_v40  ;;  %v1162_v54 = vsub.f32 %v2102_v47, %v163_v11  ;;  %v1166_v60 = vsub.f32 %v2104_v61, %v164_v50  ;;  %v1170_v29 = vsub.f32 %v2106_v63, %v165_v1  ;;  %v2109_v30 = vmax.f32 %v2108_v15, 0.0  ;;  %v2119_v63 = vld [vmem:[#allocation12_spill] sm:$0xff] }
  0x44   :  { %2100 = vst [vmem:[#allocation29_spill] sm:$0xff] %v1158_v24  ;;  %v1178_v16 = vsub.f32 %v2111_v55, %v167_v42  ;;  %v1182_v11 = vsub.f32 %v2113_v28, %v168_v2  ;;  %v2115_v47 = vmax.f32 %v1025_v27, 0.0  ;;  %v2117_v61 = vmax.f32 %v1030_v31, 0.0  ;;  %v2122_v42 = vld [vmem:[#allocation13_spill] sm:$0xff] }
  0x45   :  { %2103 = vst [vmem:[#allocation15_spill] sm:$0xff] %v1162_v54  ;;  %2105 = vst [vmem:[#allocation30_spill] sm:$0xff] %v1166_v60  ;;  %v1174_v18 = vsub.f32 %v2109_v30, %v166_v12  ;;  %v2120_v12 = vmax.f32 %v1032_v32, 0.0  ;;  %v216_v55 = vand.u32 2147483647, %v2122_v42  ;;  %v2124_v28 = vmax.f32 %v1034_v33, 0.0 }
  0x46   :  { %2107 = vst [vmem:[#allocation31_spill] sm:$0xff] %v1170_v29  ;;  %2112 = vst [vmem:[#allocation32_spill] sm:$0xff] %v1178_v16  ;;  %v1186_v50 = vsub.f32 %v2115_v47, %v169_v23  ;;  %v1190_v1 = vsub.f32 %v2117_v61, %v170_v35  ;;  %v215_v29 = vand.u32 2147483647, %v2119_v63  ;;  %v2123_v16 = vld [vmem:[#allocation14_spill] sm:$0xff]  ;;  %v2126_v63 = vmax.f32 %v1039_v37, 0.0 }
  0x47   :  { %2110 = vst [vmem:[#allocation16_spill] sm:$0xff] %v1174_v18  ;;  %2114 = vst [vmem:[#allocation33_spill] sm:$0xff] %v1182_v11  ;;  %v1195_v30 = vsub.f32 %v2120_v12, %v171_v62  ;;  %v217_v18 = vand.u32 2147483647, %v2123_v16  ;;  %v218_v2 = vand.u32 2147483647, %v987_v4  ;;  %v1202_v23 = vsub.f32 %v2124_v28, %v172_v56 }
  0x48   :  { %2116 = vst [vmem:[#allocation34_spill] sm:$0xff] %v1186_v50  ;;  %2118 = vst [vmem:[#allocation35_spill] sm:$0xff] %v1190_v1  ;;  %v219_v47 = vand.u32 2147483647, %v989_v5  ;;  %v220_v35 = vand.u32 2147483647, %v991_v6  ;;  %v1209_v62 = vsub.f32 %v2126_v63, %v173_v49 }
  0x49   :  { %2121 = vst [vmem:[#allocation12_spill] sm:$0xff] %v1195_v30  ;;  %2125 = vst [vmem:[#allocation13_spill] sm:$0xff] %v1202_v23  ;;  %v221_v61 = vand.u32 2147483647, %v993_v7  ;;  %v222_v12 = vand.u32 2147483647, %v995_v8 }
  0x4a   :  { %2127 = vst [vmem:[#allocation14_spill] sm:$0xff] %v1209_v62  ;;  %v223_v16 = vand.u32 2147483647, %v997_v9  ;;  %v224_v4 = vand.u32 2147483647, %v999_v10  ;;  %v2128_v42 = vmax.f32 %v1041_v38, 0.0 }
  0x4b   :  { %v225_v5 = vand.u32 2147483647, %v1003_v13  ;;  %v226_v6 = vand.u32 2147483647, %v1005_v14  ;;  %v2130_v28 = vld [vmem:[#allocation11_spill] sm:$0xff]  ;;  %v2132_v49 = vmax.f32 %v1043_v39, 0.0 }
  0x4c   :  { %v1216_v56 = vsub.f32 %v2128_v42, %v174_v22  ;;  %v2131_v7 = vand.u32 2147483647, %v2130_v28  ;;  %v227_v8 = vand.u32 2147483647, %v2101_v21  ;;  %v228_v9 = vand.u32 2147483647, %v1012_v19 }
  0x4d   :  { %v1224_v63 = vsub.f32 %v2132_v49, %v175_v58  ;;  %v247_v10 = vsub.f32 0.0, %v215_v29  ;;  %v2134_v62 = vmax.f32 %v1048_v44, 0.0  ;;  %v229_v13 = vand.u32 2147483647, %v1014_v20  ;;  %v2287_v40 = vld [vmem:[#allocation22_spill] sm:$0xff] }
  0x4e   :  { %2129 = vst [vmem:[#allocation36_spill] sm:$0xff] %v1216_v56  ;;  %v246_v23 = vsub.f32 0.0, %v2131_v7  ;;  %v230_v14 = vand.u32 2147483647, %v2108_v15  ;;  %v248_v42 = vsub.f32 0.0, %v216_v55  ;;  %v2136_v28 = vmax.f32 %v1050_v45, 0.0 }
  0x4f   :  { %2133 = vst [vmem:[#allocation11_spill] sm:$0xff] %v1224_v63  ;;  %v1230_v22 = vsub.f32 %v2134_v62, %v176_v59  ;;  %v231_v58 = vand.u32 2147483647, %v1021_v25  ;;  %v232_v21 = vand.u32 2147483647, %v1023_v26  ;;  %v249_v49 = vsub.f32 0.0, %v217_v18 }
  0x50   :  { %v1236_v7 = vsub.f32 %v2136_v28, %v177_v48  ;;  %v2138_v19 = vmax.f32 %v1052_v46, 0.0  ;;  %v233_v59 = vand.u32 2147483647, %v1025_v27  ;;  %v250_v62 = vsub.f32 0.0, %v218_v2 }
  0x51   :  { %2135 = vst [vmem:[#allocation37_spill] sm:$0xff] %v1230_v22  ;;  %v278_v20 = vmul.f32 1.442695, %v246_v23  ;;  %v2140_v15 = vmax.f32 %v1057_v51, 0.0  ;;  %v234_v48 = vand.u32 2147483647, %v1030_v31 }
  0x52   :  { %2137 = vst [vmem:[#allocation38_spill] sm:$0xff] %v1236_v7  ;;  %v1242_v29 = vsub.f32 %v2138_v19, %v178_v17  ;;  %v251_v28 = vsub.f32 0.0, %v219_v47  ;;  %v280_v7 = vmul.f32 1.442695, %v247_v10  ;;  %v2142_v25 = vmax.f32 %v1059_v52, 0.0 }
  0x53   :  { %v1247_v55 = vsub.f32 %v2140_v15, %v179_v43  ;;  %v235_v18 = vand.u32 2147483647, %v1032_v32  ;;  %v252_v17 = vsub.f32 0.0, %v220_v35  ;;  %v282_v19 = vmul.f32 1.442695, %v248_v42 }
  0x54   :  { %2139 = vst [vmem:[#allocation39_spill] sm:$0xff] %v1242_v29  ;;  %v1252_v26 = vsub.f32 %v2142_v25, %v180_v36  ;;  %v2144_v27 = vmax.f32 %v1061_v53, 0.0  ;;  %v236_v23 = vand.u32 2147483647, %v1034_v33  ;;  %v253_v43 = vsub.f32 0.0, %v221_v61 }
  0x55   :  { %2141 = vst [vmem:[#allocation40_spill] sm:$0xff] %v1247_v55  ;;  %v284_v15 = vmul.f32 1.442695, %v249_v49  ;;  %v237_v31 = vand.u32 2147483647, %v1039_v37  ;;  %v254_v47 = vsub.f32 0.0, %v222_v12  ;;  %735 = vpow2.f32 %v278_v20 }
  0x56   :  { %2143 = vst [vmem:[#allocation41_spill] sm:$0xff] %v1252_v26  ;;  %v1257_v2 = vsub.f32 %v2144_v27, %v181_v0  ;;  %v286_v10 = vmul.f32 1.442695, %v250_v62  ;;  %v238_v36 = vand.u32 2147483647, %v1041_v38  ;;  %v255_v25 = vsub.f32 0.0, %v223_v16 }
  0x57   :  { %737 = vpow2.f32 %v280_v7  ;;  %v288_v32 = vmul.f32 1.442695, %v251_v28  ;;  %v239_v35 = vand.u32 2147483647, %v1043_v39  ;;  %v256_v42 = vsub.f32 0.0, %v224_v4 }
  0x58   :  { %2145 = vst [vmem:[#allocation42_spill] sm:$0xff] %v1257_v2  ;;  %739 = vpow2.f32 %v282_v19  ;;  %v290_v0 = vmul.f32 1.442695, %v252_v17  ;;  %v240_v27 = vand.u32 2147483647, %v1048_v44  ;;  %v257_v33 = vsub.f32 0.0, %v225_v5 }
  0x59   :  { %741 = vpow2.f32 %v284_v15  ;;  %v292_v61 = vmul.f32 1.442695, %v253_v43  ;;  %v241_v37 = vand.u32 2147483647, %v1050_v45  ;;  %v258_v12 = vsub.f32 0.0, %v226_v6 }
  0x5a   :  { %743 = vpow2.f32 %v286_v10  ;;  %v294_v49 = vmul.f32 1.442695, %v254_v47  ;;  %v242_v38 = vand.u32 2147483647, %v1052_v46  ;;  %v259_v16 = vsub.f32 0.0, %v227_v8 }
  0x5b   :  { %745 = vpow2.f32 %v288_v32  ;;  %v296_v7 = vmul.f32 1.442695, %v255_v25  ;;  %v243_v39 = vand.u32 2147483647, %v1057_v51  ;;  %v260_v4 = vsub.f32 0.0, %v228_v9 }
  0x5c   :  { %747 = vpow2.f32 %v290_v0  ;;  %v298_v62 = vmul.f32 1.442695, %v256_v42  ;;  %v244_v44 = vand.u32 2147483647, %v1059_v52  ;;  %v261_v5 = vsub.f32 0.0, %v229_v13 }
  0x5d   :  { %749 = vpow2.f32 %v292_v61  ;;  %v300_v20 = vmul.f32 1.442695, %v257_v33  ;;  %v245_v45 = vand.u32 2147483647, %v1061_v53  ;;  %v262_v6 = vsub.f32 0.0, %v230_v14 }
  0x5e   :  { %751 = vpow2.f32 %v294_v49  ;;  %v302_v28 = vmul.f32 1.442695, %v258_v12  ;;  %v263_v17 = vsub.f32 0.0, %v231_v58  ;;  %v264_v46 = vsub.f32 0.0, %v232_v21 }
  0x5f   :  { %753 = vpow2.f32 %v296_v7  ;;  %v304_v8 = vmul.f32 1.442695, %v259_v16  ;;  %v1269_v19 = vpop.eup %735  ;;  %v265_v51 = vsub.f32 0.0, %v233_v59  ;;  %v266_v9 = vsub.f32 0.0, %v234_v48 }
  0x60   :  { %755 = vpow2.f32 %v298_v62  ;;  %v306_v43 = vmul.f32 1.442695, %v260_v4  ;;  %v267_v52 = vsub.f32 0.0, %v235_v18  ;;  %v268_v13 = vsub.f32 0.0, %v236_v23 }
  0x61   :  { %v1271_v15 = vpop.eup %737  ;;  %757 = vpow2.f32 %v300_v20  ;;  %v308_v47 = vmul.f32 1.442695, %v261_v5  ;;  %v269_v14 = vsub.f32 0.0, %v237_v31  ;;  %v270_v10 = vsub.f32 0.0, %v238_v36 }
  0x62   :  { %v1273_v53 = vpop.eup %739  ;;  %759 = vpow2.f32 %v302_v28  ;;  %v310_v58 = vmul.f32 1.442695, %v262_v6  ;;  %v271_v25 = vsub.f32 0.0, %v239_v35  ;;  %v272_v32 = vsub.f32 0.0, %v240_v27 }
  0x63   :  { %v1275_v21 = vpop.eup %741  ;;  %761 = vpow2.f32 %v304_v8  ;;  %v312_v59 = vmul.f32 1.442695, %v263_v17  ;;  %v273_v42 = vsub.f32 0.0, %v241_v37  ;;  %v274_v0 = vsub.f32 0.0, %v242_v38 }
  0x64   :  { %v1277_v48 = vpop.eup %743  ;;  %763 = vpow2.f32 %v306_v43  ;;  %v314_v18 = vmul.f32 1.442695, %v264_v46  ;;  %v275_v33 = vsub.f32 0.0, %v243_v39  ;;  %v276_v61 = vsub.f32 0.0, %v244_v44 }
  0x65   :  { %v1279_v23 = vpop.eup %745  ;;  %765 = vpow2.f32 %v308_v47  ;;  %v316_v31 = vmul.f32 1.442695, %v265_v51  ;;  %v277_v12 = vsub.f32 0.0, %v245_v45  ;;  %v318_v35 = vmul.f32 1.442695, %v266_v9 }
  0x66   :  { %v1281_v36 = vpop.eup %747  ;;  %767 = vpow2.f32 %v310_v58  ;;  %v345_v27 = vmul.f32 -0.5, %v1269_v19  ;;  %v320_v37 = vmul.f32 1.442695, %v267_v52  ;;  %v322_v38 = vmul.f32 1.442695, %v268_v13 }
  0x67   :  { %v1284_v49 = vpop.eup %749  ;;  %769 = vpow2.f32 %v312_v59  ;;  %v324_v16 = vmul.f32 1.442695, %v269_v14  ;;  %v326_v39 = vmul.f32 1.442695, %v270_v10  ;;  %v328_v4 = vmul.f32 1.442695, %v271_v25 }
  0x68   :  { %v1286_v7 = vpop.eup %751  ;;  %771 = vpow2.f32 %v314_v18  ;;  %v354_v62 = vmul.f32 -0.5, %v1271_v15  ;;  %v330_v5 = vmul.f32 1.442695, %v272_v32  ;;  %v332_v20 = vmul.f32 1.442695, %v273_v42 }
  0x69   :  { %v1289_v44 = vpop.eup %753  ;;  %773 = vpow2.f32 %v316_v31  ;;  %v334_v45 = vmul.f32 1.442695, %v274_v0  ;;  %v336_v28 = vmul.f32 1.442695, %v275_v33  ;;  %v346_v17 = vadd.f32 1.0, %v345_v27 }
  0x6a   :  { %v1291_v6 = vpop.eup %755  ;;  %775 = vpow2.f32 %v318_v35  ;;  %v363_v46 = vmul.f32 -0.5, %v1273_v53  ;;  %v338_v51 = vmul.f32 1.442695, %v276_v61  ;;  %v340_v9 = vmul.f32 1.442695, %v277_v12 }
  0x6b   :  { %v1294_v8 = vpop.eup %757  ;;  %777 = vpow2.f32 %v320_v37  ;;  %v372_v43 = vmul.f32 -0.5, %v1275_v21  ;;  %v342_v13 = vadd.f32 1.0, %v1269_v19  ;;  %v355_v14 = vadd.f32 1.0, %v354_v62 }
  0x6c   :  { %v1297_v52 = vpop.eup %759  ;;  %779 = vpow2.f32 %v322_v38  ;;  %v351_v58 = vadd.f32 1.0, %v1271_v15  ;;  %v381_v32 = vmul.f32 -0.5, %v1277_v48  ;;  %v1309_v42 = vmul.f32 %v1269_v19, %v346_v17 }
  0x6d   :  { %v1301_v10 = vpop.eup %761  ;;  %781 = vpow2.f32 %v324_v16  ;;  %v360_v0 = vadd.f32 1.0, %v1273_v53  ;;  %v364_v18 = vadd.f32 1.0, %v363_v46  ;;  %v373_v31 = vadd.f32 1.0, %v372_v43 }
  0x6e   :  { %v1306_v59 = vpop.eup %763  ;;  %783 = vpow2.f32 %v326_v39  ;;  %v390_v12 = vmul.f32 -0.5, %v1279_v23  ;;  %v1319_v27 = vmul.f32 %v1271_v15, %v355_v14  ;;  %v369_v37 = vadd.f32 1.0, %v1275_v21 }
  0x6f   :  { %v1312_v33 = vpop.eup %765  ;;  %785 = vpow2.f32 %v328_v4  ;;  %v399_v38 = vmul.f32 -0.5, %v1281_v36  ;;  %v378_v4 = vadd.f32 1.0, %v1277_v48  ;;  %v382_v62 = vadd.f32 1.0, %v381_v32 }
  0x70   :  { %v1316_v35 = vpop.eup %767  ;;  %787 = vpow2.f32 %v330_v5  ;;  %v1330_v5 = vmul.f32 %v1273_v53, %v364_v18  ;;  %v408_v43 = vmul.f32 -0.5, %v1284_v49  ;;  %v387_v39 = vadd.f32 1.0, %v1279_v23 }
  0x71   :  { %v1323_v16 = vpop.eup %769  ;;  %789 = vpow2.f32 %v332_v20  ;;  %v1337_v20 = vmul.f32 %v1275_v21, %v373_v31  ;;  %v391_v61 = vadd.f32 1.0, %v390_v12  ;;  %v400_v18 = vadd.f32 1.0, %v399_v38 }
  0x72   :  { %v1327_v17 = vpop.eup %771  ;;  %791 = vpow2.f32 %v334_v45  ;;  %2146 = vst [vmem:[#allocation43_spill] sm:$0xff] %v1330_v5  ;;  %v417_v25 = vmul.f32 -0.5, %v1286_v7  ;;  %v1347_v47 = vmul.f32 %v1277_v48, %v382_v62  ;;  %v426_v31 = vmul.f32 -0.5, %v1289_v44 }
  0x73   :  { %v1334_v14 = vpop.eup %773  ;;  %793 = vpow2.f32 %v336_v28  ;;  %v396_v28 = vadd.f32 1.0, %v1281_v36  ;;  %v405_v12 = vadd.f32 1.0, %v1284_v49  ;;  %v409_v38 = vadd.f32 1.0, %v408_v43 }
  0x74   :  { %v1340_v32 = vpop.eup %775  ;;  %795 = vpow2.f32 %v338_v51  ;;  %2147 = vst [vmem:[#allocation44_spill] sm:$0xff] %v1347_v47  ;;  %v435_v26 = vmul.f32 -0.5, %v1291_v6  ;;  %v414_v51 = vadd.f32 1.0, %v1286_v7  ;;  %v418_v29 = vadd.f32 1.0, %v417_v25 }
  0x75   :  { %v1344_v46 = vpop.eup %777  ;;  %797 = vpow2.f32 %v340_v9  ;;  %v1358_v9 = vmul.f32 %v1279_v23, %v391_v61  ;;  %v423_v61 = vadd.f32 1.0, %v1289_v44  ;;  %v427_v22 = vadd.f32 1.0, %v426_v31 }
  0x76   :  { %v1351_v2 = vpop.eup %779  ;;  %799 = vlog2.f32 %v342_v13  ;;  %v1365_v13 = vmul.f32 %v1281_v36, %v400_v18  ;;  %v1375_v63 = vmul.f32 %v1284_v49, %v409_v38  ;;  %v444_v18 = vmul.f32 -0.5, %v1294_v8 }
  0x77   :  { %v1355_v45 = vpop.eup %781  ;;  %801 = vlog2.f32 %v351_v58  ;;  %v432_v25 = vadd.f32 1.0, %v1291_v6  ;;  %v453_v58 = vmul.f32 -0.5, %v1297_v52  ;;  %v438_v31 = vand.u32 2147483647, %v1291_v6 }
  0x78   :  { %v1362_v55 = vpop.eup %783  ;;  %803 = vlog2.f32 %v360_v0  ;;  %2148 = vst [vmem:[#allocation45_spill] sm:$0xff] %v1365_v13  ;;  %2149 = vst [vmem:[#allocation46_spill] sm:$0xff] %v1375_v63  ;;  %v462_v38 = vmul.f32 -0.5, %v1301_v10  ;;  %v2157_v11 = vand.u32 2147483647, %v1271_v15  ;;  %v2158_v60 = vmov 0 }
  0x79   :  { %v1368_v43 = vpop.eup %785  ;;  %805 = vlog2.f32 %v369_v37  ;;  %v436_v37 = vadd.f32 1.0, %v435_v26  ;;  %v441_v26 = vadd.f32 1.0, %v1294_v8  ;;  %v471_v1 = vmul.f32 -0.5, %v1306_v59 }
  0x7a   :  { %v1372_v62 = vpop.eup %787  ;;  %807 = vlog2.f32 %v378_v4  ;;  %v1386_v4 = vmul.f32 %v1286_v7, %v418_v29  ;;  %vm1407_vm1 = vcmp.lt.f32.partialorder %v2157_v11, 0.0004427343  ;;  %v454_v15 = vadd.f32 1.0, %v453_v58  ;;  %v2275_v29 = vld [vmem:[#allocation19_spill] sm:$0xff] }
  0x7b   :  { %v1379_v56 = vpop.eup %789  ;;  %809 = vlog2.f32 %v387_v39  ;;  %v1393_v39 = vmul.f32 %v1289_v44, %v427_v22  ;;  %v2159_v60 = vsel %vm1407_vm1, 4294967295, %v2158_v60  ;;  %v445_v22 = vadd.f32 1.0, %v444_v18 }
  0x7c   :  { %2150 = vst [vmem:[#allocation47_spill] sm:$0xff] %v1379_v56  ;;  %v1383_v30 = vpop.eup %791  ;;  %811 = vlog2.f32 %v396_v28  ;;  %v2154_v28 = vand.u32 2147483647, %v1269_v19  ;;  %2160 = vst [vmem:[#allocation51_spill] sm:$0xff] %v2159_v60  ;;  %v2162_v19 = vand.u32 2147483647, %v1273_v53  ;;  %v1422_v11 = vmul.f32 %v1291_v6, %v436_v37 }
  0x7d   :  { %2151 = vst [vmem:[#allocation48_spill] sm:$0xff] %v1383_v30  ;;  %v1390_v0 = vpop.eup %793  ;;  %813 = vlog2.f32 %v405_v12  ;;  %v450_v12 = vadd.f32 1.0, %v1297_v52  ;;  %v2165_v24 = vand.u32 2147483647, %v1275_v21  ;;  %v2168_v53 = vand.u32 2147483647, %v1277_v48 }
  0x7e   :  { %2152 = vst [vmem:[#allocation49_spill] sm:$0xff] %v1390_v0  ;;  %v1397_v50 = vpop.eup %795  ;;  %vm1401_vm0 = vcmp.lt.f32.partialorder %v2154_v28, 0.0004427343  ;;  %815 = vlog2.f32 %v414_v51  ;;  %vm1417_vm2 = vcmp.lt.f32.partialorder %v2162_v19, 0.0004427343  ;;  %v459_v51 = vadd.f32 1.0, %v1301_v10 }
  0x7f   :  { %2153 = vst [vmem:[#allocation50_spill] sm:$0xff] %v1397_v50  ;;  %v1413_v54 = vpop.eup %797  ;;  %817 = vlog2.f32 %v423_v61  ;;  %vm1427_vm3 = vcmp.lt.f32.partialorder %v2165_v24, 0.0004427343  ;;  %vm1433_vm4 = vcmp.lt.f32.partialorder %v2168_v53, 0.0004427343  ;;  %v2169_v19 = vmov 0 }
  0x80   :  { %2161 = vst [vmem:[#allocation52_spill] sm:$0xff] %v1413_v54  ;;  %v800_v18 = vpop.eup %799  ;;  %v2170_v19 = vsel %vm1433_vm4, 4294967295, %v2169_v19  ;;  %819 = vlog2.f32 %v432_v25  ;;  %v463_v61 = vadd.f32 1.0, %v462_v38  ;;  %v468_v6 = vadd.f32 1.0, %v1306_v59 }
  0x81   :  { %v480_v58 = vmul.f32 -0.5, %v1312_v33  ;;  %v802_v37 = vpop.eup %801  ;;  %v2171_v57 = vand.u32 2147483647, %v1279_v23  ;;  %v2172_v24 = vmov 0  ;;  %821 = vlog2.f32 %v441_v26 }
  0x82   :  { %v456_v21 = vand.u32 2147483647, %v1297_v52  ;;  %v477_v48 = vadd.f32 1.0, %v1312_v33  ;;  %v489_v53 = vmul.f32 -0.5, %v1316_v35  ;;  %v804_v25 = vpop.eup %803  ;;  %v2174_v38 = vand.u32 2147483647, %v1281_v36 }
  0x83   :  { %vm1441_vm5 = vcmp.lt.f32.partialorder %v2171_v57, 0.0004427343  ;;  %v1455_v23 = vmul.f32 %v1294_v8, %v445_v22  ;;  %823 = vlog2.f32 %v450_v12  ;;  %v472_v57 = vadd.f32 1.0, %v471_v1  ;;  %v806_v41 = vpop.eup %805 }
  0x84   :  { %v2173_v24 = vsel %vm1441_vm5, 4294967295, %v2172_v24  ;;  %vm1450_vm6 = vcmp.lt.f32.partialorder %v2174_v38, 0.0004427343  ;;  %v486_v26 = vadd.f32 1.0, %v1316_v35  ;;  %v2178_v3 = vand.u32 2147483647, %v1284_v49  ;;  %v808_v50 = vpop.eup %807 }
  0x85   :  { %v2176_v34 = vsel %vm1450_vm6, 4294967295, %v2175_v34  ;;  %v1465_v36 = vmul.f32 %v1297_v52, %v454_v15  ;;  %825 = vlog2.f32 %v459_v51  ;;  %v465_v38 = vand.u32 2147483647, %v1301_v10 }
  0x86   :  { %2177 = vst [vmem:[#allocation53_spill] sm:$0xff] %v2176_v34  ;;  %vm1460_vm7 = vcmp.lt.f32.partialorder %v2178_v3, 0.0004427343  ;;  %v495_v22 = vadd.f32 1.0, %v1323_v16  ;;  %v1470_v1 = vmul.f32 %v1301_v10, %v463_v61  ;;  %827 = vlog2.f32 %v468_v6  ;;  %v810_v3 = vpop.eup %809 }
  0x87   :  { %2181 = vst [vmem:[#allocation54_spill] sm:$0xff] %v1465_v36  ;;  %v474_v12 = vand.u32 2147483647, %v1306_v59  ;;  %v481_v49 = vadd.f32 1.0, %v480_v58  ;;  %v1473_v0 = vmul.f32 0.6931472, %v800_v18  ;;  %829 = vlog2.f32 %v477_v48  ;;  %v812_v56 = vpop.eup %811 }
  0x88   :  { %2182 = vst [vmem:[#allocation55_spill] sm:$0xff] %v1470_v1  ;;  %v1475_v30 = vmul.f32 0.6931472, %v802_v37  ;;  %v2183_v52 = vand.u32 2147483647, %v1286_v7  ;;  %v2184_v15 = vmov 0  ;;  %v1496_v7 = vmul.f32 %v1306_v59, %v472_v57  ;;  %v814_v37 = vpop.eup %813 }
  0x89   :  { %v490_v51 = vadd.f32 1.0, %v489_v53  ;;  %v1483_v10 = vmul.f32 0.6931472, %v804_v25  ;;  %v2187_v61 = vand.u32 2147483647, %v1289_v44  ;;  %831 = vlog2.f32 %v486_v26  ;;  %v816_v25 = vpop.eup %815 }
  0x8a   :  { %vm1479_vm8 = vcmp.lt.f32.partialorder %v2183_v52, 0.0004427343  ;;  %vm1491_vm10 = vcmp.lt.f32.partialorder %v438_v31, 0.0004427343  ;;  %2192 = vst [vmem:[#allocation57_spill] sm:$0xff] %v1496_v7  ;;  %833 = vlog2.f32 %v495_v22  ;;  %v498_v44 = vmul.f32 -0.5, %v1323_v16  ;;  %v818_v26 = vpop.eup %817 }
  0x8b   :  { %v2185_v15 = vsel %vm1479_vm8, 4294967295, %v2184_v15  ;;  %2186 = vst [vmem:[#allocation56_spill] sm:$0xff] %v1483_v10  ;;  %vm1487_vm9 = vcmp.lt.f32.partialorder %v2187_v61, 0.0004427343  ;;  %v483_v58 = vand.u32 2147483647, %v1312_v33 }
  0x8c   :  { %v1499_v48 = vmul.f32 0.6931472, %v806_v41  ;;  %v1501_v53 = vmul.f32 0.6931472, %v808_v50  ;;  %v1504_v52 = vmul.f32 0.6931472, %v810_v3  ;;  %v1517_v41 = vmul.f32 %v1312_v33, %v481_v49  ;;  %v820_v3 = vpop.eup %819 }
  0x8d   :  { %v2196_v31 = vand.u32 2147483647, %v1294_v8  ;;  %vm1512_vm12 = vcmp.lt.f32.partialorder %v456_v21, 0.0004427343  ;;  %v2199_v59 = vmov 0  ;;  %v504_v57 = vadd.f32 1.0, %v1327_v17  ;;  %v822_v21 = vpop.eup %821 }
  0x8e   :  { %2193 = vst [vmem:[#allocation58_spill] sm:$0xff] %v1499_v48  ;;  %2194 = vst [vmem:[#allocation59_spill] sm:$0xff] %v1501_v53  ;;  %v2200_v59 = vsel %vm1512_vm12, 4294967295, %v2199_v59  ;;  %v492_v50 = vand.u32 2147483647, %v1316_v35  ;;  %v2203_v33 = vmov 0  ;;  %v1536_v49 = vmul.f32 %v1316_v35, %v490_v51  ;;  %v824_v5 = vpop.eup %823 }
  0x8f   :  { %2195 = vst [vmem:[#allocation60_spill] sm:$0xff] %v1504_v52  ;;  %vm1508_vm11 = vcmp.lt.f32.partialorder %v2196_v31, 0.0004427343  ;;  %2201 = vst [vmem:[#allocation61_spill] sm:$0xff] %v1517_v41  ;;  %v1529_v22 = vmul.f32 0.6931472, %v812_v56  ;;  %835 = vlog2.f32 %v504_v57  ;;  %v826_v35 = vpop.eup %825 }
  0x90   :  { %vm1531_vm13 = vcmp.lt.f32.partialorder %v465_v38, 0.0004427343  ;;  %2206 = vst [vmem:[#allocation64_spill] sm:$0xff] %v1536_v49  ;;  %v1542_v8 = vmul.f32 0.6931472, %v814_v37  ;;  %v507_v56 = vmul.f32 -0.5, %v1327_v17  ;;  %v828_v38 = vpop.eup %827 }
  0x91   :  { %2202 = vst [vmem:[#allocation62_spill] sm:$0xff] %v1529_v22  ;;  %v2204_v33 = vsel %vm1531_vm13, 4294967295, %v2203_v33  ;;  %v501_v60 = vand.u32 2147483647, %v1323_v16  ;;  %vm1554_vm14 = vcmp.lt.f32.partialorder %v474_v12, 0.0004427343 }
  0x92   :  { %2205 = vst [vmem:[#allocation63_spill] sm:$0xff] %v2204_v33  ;;  %2207 = vst [vmem:[#allocation65_spill] sm:$0xff] %v1542_v8  ;;  %v2208_v51 = vmov 0  ;;  %vm1558_vm15 = vcmp.lt.f32.partialorder %v483_v58, 0.0004427343  ;;  %v2211_v37 = vmov 0 }
  0x93   :  { %v2209_v51 = vsel %vm1554_vm14, 4294967295, %v2208_v51  ;;  %v2212_v37 = vsel %vm1558_vm15, 4294967295, %v2211_v37  ;;  %v499_v31 = vadd.f32 1.0, %v498_v44  ;;  %v513_v10 = vadd.f32 1.0, %v1334_v14  ;;  %v830_v44 = vpop.eup %829  ;;  %v2244_v49 = vld [vmem:[#allocation47_spill] sm:$0xff]  ;;  %v2311_v18 = vld [vmem:[#allocation54_spill] sm:$0xff] }
  0x94   :  { %2210 = vst [vmem:[#allocation66_spill] sm:$0xff] %v2209_v51  ;;  %2213 = vst [vmem:[#allocation67_spill] sm:$0xff] %v2212_v37  ;;  %v1567_v48 = vmul.f32 0.6931472, %v816_v25  ;;  %vm1569_vm4 = vcmp.lt.f32.partialorder %v492_v50, 0.0004427343  ;;  %v832_v13 = vpop.eup %831 }
  0x95   :  { %v2214_v12 = vmov 0  ;;  %v516_v58 = vmul.f32 -0.5, %v1334_v14  ;;  %v1578_v53 = vmul.f32 0.6931472, %v818_v26  ;;  %v1580_v47 = vmul.f32 0.6931472, %v820_v3  ;;  %v834_v63 = vpop.eup %833 }
  0x96   :  { %v2215_v12 = vsel %vm1569_vm4, 4294967295, %v2214_v12  ;;  %v522_v25 = vadd.f32 1.0, %v1340_v32  ;;  %vm1587_vm5 = vcmp.lt.f32.partialorder %v501_v60, 0.0004427343  ;;  %v2217_v57 = vmov 0 }
  0x97   :  { %2216 = vst [vmem:[#allocation68_spill] sm:$0xff] %v2215_v12  ;;  %v2218_v57 = vsel %vm1587_vm5, 4294967295, %v2217_v57  ;;  %v508_v52 = vadd.f32 1.0, %v507_v56  ;;  %v510_v34 = vand.u32 2147483647, %v1327_v17  ;;  %v1597_v22 = vmul.f32 %v1323_v16, %v499_v31 }
  0x98   :  { %2219 = vst [vmem:[#allocation69_spill] sm:$0xff] %v2218_v57  ;;  %v1592_v26 = vmul.f32 0.6931472, %v822_v21  ;;  %v1594_v3 = vmul.f32 0.6931472, %v824_v5  ;;  %837 = vlog2.f32 %v513_v10  ;;  %v517_v56 = vadd.f32 1.0, %v516_v58 }
  0x99   :  { %2221 = vst [vmem:[#allocation71_spill] sm:$0xff] %v1597_v22  ;;  %v1603_v50 = vmul.f32 0.6931472, %v826_v35  ;;  %v525_v8 = vmul.f32 -0.5, %v1340_v32  ;;  %839 = vlog2.f32 %v522_v25  ;;  %v531_v10 = vadd.f32 1.0, %v1344_v46 }
  0x9a   :  { %2220 = vst [vmem:[#allocation70_spill] sm:$0xff] %v1594_v3  ;;  %v1615_v21 = vmul.f32 0.6931472, %v828_v38  ;;  %v1617_v31 = vmul.f32 0.6931472, %v830_v44  ;;  %v1620_v35 = vmul.f32 %v1327_v17, %v508_v52  ;;  %v2226_v58 = vmov 0  ;;  %v836_v3 = vpop.eup %835 }
  0x9b   :  { %2222 = vst [vmem:[#allocation72_spill] sm:$0xff] %v1603_v50  ;;  %vm1622_vm8 = vcmp.lt.f32.partialorder %v510_v34, 0.0004427343  ;;  %v519_v5 = vand.u32 2147483647, %v1334_v14  ;;  %v540_v17 = vadd.f32 1.0, %v1351_v2  ;;  %v1645_v16 = vmul.f32 %v1334_v14, %v517_v56 }
  0x9c   :  { %2223 = vst [vmem:[#allocation73_spill] sm:$0xff] %v1615_v21  ;;  %2224 = vst [vmem:[#allocation74_spill] sm:$0xff] %v1617_v31  ;;  %v2227_v58 = vsel %vm1622_vm8, 4294967295, %v2226_v58  ;;  %v1635_v44 = vmul.f32 0.6931472, %v832_v13  ;;  %v526_v25 = vadd.f32 1.0, %v525_v8  ;;  %841 = vlog2.f32 %v531_v10 }
  0x9d   :  { %2225 = vst [vmem:[#allocation75_spill] sm:$0xff] %v1620_v35  ;;  %2228 = vst [vmem:[#allocation76_spill] sm:$0xff] %v2227_v58  ;;  %v1642_v52 = vmul.f32 0.6931472, %v834_v63  ;;  %v528_v60 = vand.u32 2147483647, %v1340_v32  ;;  %843 = vlog2.f32 %v540_v17  ;;  %v2306_v54 = vsel %vm1491_vm10, %v1422_v11, %v1580_v47 }
  0x9e   :  { %2229 = vst [vmem:[#allocation77_spill] sm:$0xff] %v1635_v44  ;;  %2231 = vst [vmem:[#allocation79_spill] sm:$0xff] %v1645_v16  ;;  %v534_v38 = vmul.f32 -0.5, %v1344_v46  ;;  %v549_v13 = vadd.f32 1.0, %v1355_v45  ;;  %vm1658_vm13 = vcmp.lt.f32.partialorder %v519_v5, 0.0004427343  ;;  %v1674_v63 = vmul.f32 %v1340_v32, %v526_v25 }
  0x9f   :  { %2230 = vst [vmem:[#allocation78_spill] sm:$0xff] %v1642_v52  ;;  %v2232_v14 = vmov 0  ;;  %v558_v8 = vadd.f32 1.0, %v1362_v55  ;;  %v537_v10 = vand.u32 2147483647, %v1344_v46  ;;  %v543_v33 = vmul.f32 -0.5, %v1351_v2 }
  0xa0   :  { %v2233_v14 = vsel %vm1658_vm13, 4294967295, %v2232_v14  ;;  %2235 = vst [vmem:[#allocation81_spill] sm:$0xff] %v1674_v63  ;;  %v552_v34 = vmul.f32 -0.5, %v1355_v45  ;;  %v567_v31 = vadd.f32 1.0, %v1368_v43  ;;  %v1678_v12 = vmul.f32 0.6931472, %v836_v3 }
  0xa1   :  { %2234 = vst [vmem:[#allocation80_spill] sm:$0xff] %v2233_v14  ;;  %vm1680_vm4 = vcmp.lt.f32.partialorder %v528_v60, 0.0004427343  ;;  %v2237_v56 = vmov 0  ;;  %v535_v17 = vadd.f32 1.0, %v534_v38  ;;  %845 = vlog2.f32 %v549_v13  ;;  %v2256_v35 = vld [vmem:[#allocation50_spill] sm:$0xff] }
  0xa2   :  { %v838_v41 = vpop.eup %837  ;;  %2236 = vst [vmem:[#allocation82_spill] sm:$0xff] %v1678_v12  ;;  %v2238_v56 = vsel %vm1680_vm4, 4294967295, %v2237_v56  ;;  %v546_v44 = vand.u32 2147483647, %v1351_v2  ;;  %v555_v5 = vand.u32 2147483647, %v1355_v45  ;;  %847 = vlog2.f32 %v558_v8 }
  0xa3   :  { %2239 = vst [vmem:[#allocation83_spill] sm:$0xff] %v2238_v56  ;;  %v561_v32 = vmul.f32 -0.5, %v1362_v55  ;;  %v840_v25 = vpop.eup %839  ;;  %vm1687_vm5 = vcmp.lt.f32.partialorder %v537_v10, 0.0004427343  ;;  %v2240_v52 = vmov 0  ;;  %v544_v3 = vadd.f32 1.0, %v543_v33 }
  0xa4   :  { %v2241_v52 = vsel %vm1687_vm5, 4294967295, %v2240_v52  ;;  %849 = vlog2.f32 %v567_v31  ;;  %v570_v60 = vmul.f32 -0.5, %v1368_v43  ;;  %v576_v22 = vadd.f32 1.0, %v1372_v62  ;;  %v2314_v11 = vld [vmem:[#allocation15_spill] sm:$0xff]  ;;  %v2373_v14 = vld [vmem:[#allocation40_spill] sm:$0xff] }
  0xa5   :  { %2242 = vst [vmem:[#allocation84_spill] sm:$0xff] %v2241_v52  ;;  %v1693_v38 = vmul.f32 0.6931472, %v838_v41  ;;  %v553_v13 = vadd.f32 1.0, %v552_v34  ;;  %v579_v57 = vmul.f32 -0.5, %v1372_v62  ;;  %v585_v8 = vadd.f32 1.0, %v2244_v49 }
  0xa6   :  { %v1702_v37 = vmul.f32 %v1344_v46, %v535_v17  ;;  %v564_v33 = vand.u32 2147483647, %v1362_v55  ;;  %851 = vlog2.f32 %v576_v22  ;;  %v1705_v31 = vmul.f32 0.6931472, %v840_v25  ;;  %v842_v21 = vpop.eup %841  ;;  %v2250_v22 = vld [vmem:[#allocation48_spill] sm:$0xff] }
  0xa7   :  { %2243 = vst [vmem:[#allocation85_spill] sm:$0xff] %v1693_v38  ;;  %vm1707_vm15 = vcmp.lt.f32.partialorder %v546_v44, 0.0004427343  ;;  %v562_v34 = vadd.f32 1.0, %v561_v32  ;;  %853 = vlog2.f32 %v585_v8  ;;  %v1712_v7 = vmul.f32 %v1351_v2, %v544_v3  ;;  %v2266_v3 = vld [vmem:[#allocation17_spill] sm:$0xff] }
  0xa8   :  { %2245 = vst [vmem:[#allocation47_spill] sm:$0xff] %v1705_v31  ;;  %vm1714_vm14 = vcmp.lt.f32.partialorder %v555_v5, 0.0004427343  ;;  %v571_v46 = vadd.f32 1.0, %v570_v60  ;;  %v573_v17 = vand.u32 2147483647, %v1368_v43  ;;  %v1725_v32 = vmul.f32 %v1355_v45, %v553_v13  ;;  %v844_v5 = vpop.eup %843 }
  0xa9   :  { %v594_v25 = vadd.f32 1.0, %v2250_v22  ;;  %v580_v8 = vadd.f32 1.0, %v579_v57  ;;  %v582_v2 = vand.u32 2147483647, %v1372_v62  ;;  %vm1728_vm8 = vcmp.lt.f32.partialorder %v564_v33, 0.0004427343 }
  0xaa   :  { %v588_v60 = vmul.f32 -0.5, %v2244_v49  ;;  %v591_v12 = vand.u32 2147483647, %v2244_v49  ;;  %v1738_v45 = vmul.f32 0.6931472, %v842_v21  ;;  %v1741_v57 = vmul.f32 %v1362_v55, %v562_v34  ;;  %v2253_v13 = vld [vmem:[#allocation49_spill] sm:$0xff] }
  0xab   :  { %855 = vlog2.f32 %v594_v25  ;;  %v603_v33 = vadd.f32 1.0, %v2253_v13  ;;  %v846_v38 = vpop.eup %845  ;;  %v1745_v16 = vmul.f32 %v1368_v43, %v571_v46  ;;  %vm1747_vm13 = vcmp.lt.f32.partialorder %v573_v17, 0.0004427343  ;;  %v2282_v34 = vld [vmem:[#allocation21_spill] sm:$0xff]  ;;  %v2297_v31 = vld [vmem:[#allocation46_spill] sm:$0xff] }
  0xac   :  { %v597_v25 = vmul.f32 -0.5, %v2250_v22  ;;  %v612_v56 = vadd.f32 1.0, %v2256_v35  ;;  %v848_v44 = vpop.eup %847  ;;  %v1753_v21 = vmul.f32 0.6931472, %v844_v5  ;;  %v1756_v55 = vmul.f32 %v1372_v62, %v580_v8  ;;  %v2261_v5 = vld [vmem:[#allocation52_spill] sm:$0xff] }
  0xad   :  { %vm1758_vm4 = vcmp.lt.f32.partialorder %v582_v2, 0.0004427343  ;;  %v606_v43 = vmul.f32 -0.5, %v2253_v13  ;;  %v589_v17 = vadd.f32 1.0, %v588_v60  ;;  %vm1763_vm12 = vcmp.lt.f32.partialorder %v591_v12, 0.0004427343 }
  0xae   :  { %v850_v46 = vpop.eup %849  ;;  %857 = vlog2.f32 %v603_v33  ;;  %v615_v63 = vmul.f32 -0.5, %v2256_v35  ;;  %v1772_v8 = vmul.f32 0.6931472, %v846_v38  ;;  %v600_v2 = vand.u32 2147483647, %v2250_v22 }
  0xaf   :  { %v621_v58 = vadd.f32 1.0, %v2261_v5  ;;  %v1776_v60 = vmul.f32 0.6931472, %v848_v44  ;;  %v598_v12 = vadd.f32 1.0, %v597_v25  ;;  %859 = vlog2.f32 %v612_v56 }
  0xb0   :  { %v852_v51 = vpop.eup %851  ;;  %v624_v33 = vmul.f32 -0.5, %v2261_v5  ;;  %v1779_v1 = vmul.f32 0.6931472, %v850_v46  ;;  %v607_v36 = vadd.f32 1.0, %v606_v43  ;;  %v609_v52 = vand.u32 2147483647, %v2253_v13 }
  0xb1   :  { %v854_v50 = vpop.eup %853  ;;  %861 = vlog2.f32 %v621_v58  ;;  %v548_v38 = vsel %vm1707_vm15, %v1712_v7, %v1753_v21  ;;  %v1787_v62 = vmul.f32 %v2244_v49, %v589_v17  ;;  %v616_v44 = vadd.f32 1.0, %v615_v63  ;;  %v2318_v58 = vld [vmem:[#allocation72_spill] sm:$0xff] }
  0xb2   :  { %v618_v56 = vand.u32 2147483647, %v2256_v35  ;;  %v557_v25 = vsel %vm1714_vm14, %v1725_v32, %v1772_v8  ;;  %v1794_v43 = vmul.f32 0.6931472, %v852_v51  ;;  %vm1796_vm5 = vcmp.lt.f32.partialorder %v600_v2, 0.0004427343 }
  0xb3   :  { %v627_v41 = vand.u32 2147483647, %v2261_v5  ;;  %v566_v49 = vsel %vm1728_vm8, %v1741_v57, %v1776_v60  ;;  %v1805_v63 = vmul.f32 0.6931472, %v854_v50  ;;  %v1808_v21 = vmul.f32 %v2250_v22, %v598_v12  ;;  %v2279_v60 = vld [vmem:[#allocation20_spill] sm:$0xff] }
  0xb4   :  { %v625_v10 = vadd.f32 1.0, %v624_v33  ;;  %v575_v51 = vsel %vm1747_vm13, %v1745_v16, %v1779_v1  ;;  %v1815_v32 = vmul.f32 %v2253_v13, %v607_v36  ;;  %vm1817_vm14 = vcmp.lt.f32.partialorder %v609_v52, 0.0004427343  ;;  %v2270_v36 = vld [vmem:[#allocation18_spill] sm:$0xff]  ;;  %v2277_v13 = vld [vmem:[#allocation56_spill] sm:$0xff]  ;;  %v2285_v33 = vld [vmem:[#allocation59_spill] sm:$0xff] }
  0xb5   :  { %v856_v7 = vpop.eup %855  ;;  %v2267_v50 = vsel %vm1401_vm0, %v1309_v42, %v1473_v0  ;;  %v617_v17 = vmul.f32 %v2256_v35, %v616_v44  ;;  %vm1828_vm8 = vcmp.lt.f32.partialorder %v618_v56, 0.0004427343  ;;  %v2272_v16 = vsel %vm1407_vm1, %v1319_v27, %v1475_v30  ;;  %v2276_v35 = vld [vmem:[#allocation43_spill] sm:$0xff]  ;;  %v2280_v30 = vld [vmem:[#allocation58_spill] sm:$0xff] }
  0xb6   :  { %v630_v22 = vadd.f32 %v2267_v50, %v2266_v3  ;;  %v596_v57 = vmul.f32 0.6931472, %v856_v7  ;;  %v631_v52 = vadd.f32 %v2272_v16, %v2270_v36  ;;  %v584_v42 = vsel %vm1758_vm4, %v1756_v55, %v1794_v43  ;;  %v2284_v55 = vld [vmem:[#allocation44_spill] sm:$0xff]  ;;  %v2293_v36 = vld [vmem:[#allocation45_spill] sm:$0xff]  ;;  %v2294_v1 = vld [vmem:[#allocation62_spill] sm:$0xff] }
  0xb7   :  { %vm1842_vm0 = vcmp.lt.f32.partialorder %v627_v41, 0.0004427343  ;;  %v2278_v8 = vsel %vm1417_vm2, %v2276_v35, %v2277_v13  ;;  %v2281_v27 = vsel %vm1427_vm3, %v1337_v20, %v2280_v30  ;;  %vm2283_vm1 = vnez %v2170_v19  ;;  %v2289_v20 = vld [vmem:[#allocation60_spill] sm:$0xff]  ;;  %v2291_v19 = vld [vmem:[#allocation23_spill] sm:$0xff]  ;;  %v2303_v13 = vld [vmem:[#allocation26_spill] sm:$0xff] }
  0xb8   :  { %v632_v2 = vadd.f32 %v2278_v8, %v2275_v29  ;;  %v633_v12 = vadd.f32 %v2281_v27, %v2279_v60  ;;  %v2286_v44 = vsel %vm2283_vm1, %v2284_v55, %v2285_v33  ;;  %v858_v43 = vpop.eup %857  ;;  %v593_v28 = vsel %vm1763_vm12, %v1787_v62, %v1805_v63  ;;  %v2296_v35 = vld [vmem:[#allocation24_spill] sm:$0xff]  ;;  %v2298_v62 = vld [vmem:[#allocation65_spill] sm:$0xff]  ;;  %v2305_v30 = vld [vmem:[#allocation27_spill] sm:$0xff] }
  0xb9   :  { %v634_v56 = vadd.f32 %v2286_v44, %v2282_v34  ;;  %v626_v41 = vmul.f32 %v2261_v5, %v625_v10  ;;  %vm2288_vm2 = vnez %v2173_v24  ;;  %v2295_v16 = vsel %vm1450_vm6, %v2293_v36, %v2294_v1  ;;  %v2300_v10 = vld [vmem:[#allocation25_spill] sm:$0xff]  ;;  %v860_v34 = vpop.eup %859  ;;  %v2315_v33 = vld [vmem:[#allocation63_spill] sm:$0xff] }
  0xba   :  { %v2290_v7 = vsel %vm2288_vm2, %v1358_v9, %v2289_v20  ;;  %v636_v29 = vadd.f32 %v2295_v16, %v2291_v19  ;;  %v2299_v5 = vsel %vm1460_vm7, %v2297_v31, %v2298_v62  ;;  %vm2301_vm3 = vnez %v2185_v15  ;;  %v2307_v15 = vld [vmem:[#allocation28_spill] sm:$0xff]  ;;  %v2317_v44 = vld [vmem:[#allocation55_spill] sm:$0xff]  ;;  %v2320_v20 = vld [vmem:[#allocation30_spill] sm:$0xff] }
  0xbb   :  { %v635_v3 = vadd.f32 %v2290_v7, %v2287_v40  ;;  %v637_v63 = vadd.f32 %v2299_v5, %v2296_v35  ;;  %v2302_v9 = vsel %vm2301_vm3, %v1386_v4, %v1567_v48  ;;  %v2304_v8 = vsel %vm1487_vm9, %v1393_v39, %v1578_v53  ;;  %v2309_v48 = vld [vmem:[#allocation29_spill] sm:$0xff]  ;;  %v2312_v53 = vld [vmem:[#allocation70_spill] sm:$0xff]  ;;  %v862_v40 = vpop.eup %861  ;;  %v2326_v50 = vld [vmem:[#allocation31_spill] sm:$0xff] }
  0xbc   :  { %v638_v24 = vadd.f32 %v2302_v9, %v2300_v10  ;;  %v639_v60 = vadd.f32 %v2304_v8, %v2303_v13  ;;  %v640_v27 = vadd.f32 %v2306_v54, %v2305_v30  ;;  %v602_v4 = vsel %vm1796_vm5, %v1808_v21, %v596_v57  ;;  %v2321_v7 = vld [vmem:[#allocation66_spill] sm:$0xff]  ;;  %v2327_v36 = vld [vmem:[#allocation67_spill] sm:$0xff]  ;;  %v2329_v1 = vld [vmem:[#allocation61_spill] sm:$0xff] }
  0xbd   :  { %v2308_v6 = vsel %vm1508_vm11, %v1455_v23, %v1592_v26  ;;  %vm2310_vm4 = vnez %v2200_v59  ;;  %vm2316_vm6 = vnez %v2315_v33  ;;  %v605_v61 = vmul.f32 0.6931472, %v858_v43  ;;  %v2323_v23 = vld [vmem:[#allocation57_spill] sm:$0xff]  ;;  %v2330_v16 = vld [vmem:[#allocation74_spill] sm:$0xff]  ;;  %v2332_v62 = vld [vmem:[#allocation16_spill] sm:$0xff] }
  0xbe   :  { %v641_v39 = vadd.f32 %v2308_v6, %v2307_v15  ;;  %v2313_v55 = vsel %vm2310_vm4, %v2311_v18, %v2312_v53  ;;  %v2319_v21 = vsel %vm2316_vm6, %v2317_v44, %v2318_v58  ;;  %vm2322_vm5 = vnez %v2321_v7  ;;  %v2324_v26 = vld [vmem:[#allocation73_spill] sm:$0xff]  ;;  %v2333_v5 = vld [vmem:[#allocation68_spill] sm:$0xff]  ;;  %v2341_v54 = vld [vmem:[#allocation71_spill] sm:$0xff] }
  0xbf   :  { %v642_v47 = vadd.f32 %v2313_v55, %v2309_v48  ;;  %v643_v57 = vadd.f32 %v2319_v21, %v2314_v11  ;;  %v2325_v19 = vsel %vm2322_vm5, %v2323_v23, %v2324_v26  ;;  %vm2328_vm7 = vnez %v2327_v36  ;;  %v2335_v10 = vld [vmem:[#allocation64_spill] sm:$0xff]  ;;  %v2336_v9 = vld [vmem:[#allocation77_spill] sm:$0xff]  ;;  %v2342_v15 = vld [vmem:[#allocation78_spill] sm:$0xff] }
  0xc0   :  { %v644_v59 = vadd.f32 %v2325_v19, %v2320_v20  ;;  %v2331_v35 = vsel %vm2328_vm7, %v2329_v1, %v2330_v16  ;;  %vm2334_vm9 = vnez %v2333_v5  ;;  %v2338_v8 = vld [vmem:[#allocation32_spill] sm:$0xff]  ;;  %v2339_v30 = vld [vmem:[#allocation69_spill] sm:$0xff]  ;;  %v2347_v55 = vld [vmem:[#allocation75_spill] sm:$0xff]  ;;  %v662_v19 = vadd.f32 %v634_v56, %v630_v22 }
  0xc1   :  { %v645_v31 = vadd.f32 %v2331_v35, %v2326_v50  ;;  %v2337_v43 = vsel %vm2334_vm9, %v2335_v10, %v2336_v9  ;;  %vm2340_vm10 = vnez %v2339_v30  ;;  %v2344_v18 = vld [vmem:[#allocation33_spill] sm:$0xff]  ;;  %v2345_v53 = vld [vmem:[#allocation76_spill] sm:$0xff]  ;;  %v2348_v11 = vld [vmem:[#allocation82_spill] sm:$0xff]  ;;  %v614_v50 = vmul.f32 0.6931472, %v860_v34 }
  0xc2   :  { %v646_v13 = vadd.f32 %v2337_v43, %v2332_v62  ;;  %v2343_v6 = vsel %vm2340_vm10, %v2341_v54, %v2342_v15  ;;  %vm2346_vm11 = vnez %v2345_v53  ;;  %v2350_v58 = vld [vmem:[#allocation34_spill] sm:$0xff]  ;;  %v2351_v21 = vld [vmem:[#allocation80_spill] sm:$0xff]  ;;  %v2353_v20 = vld [vmem:[#allocation79_spill] sm:$0xff]  ;;  %v669_v36 = vadd.f32 %v635_v3, %v631_v52 }
  0xc3   :  { %v647_v48 = vadd.f32 %v2343_v6, %v2338_v8  ;;  %v2349_v33 = vsel %vm2346_vm11, %v2347_v55, %v2348_v11  ;;  %vm2352_vm12 = vnez %v2351_v21  ;;  %v2354_v7 = vld [vmem:[#allocation85_spill] sm:$0xff]  ;;  %v676_v1 = vadd.f32 %v636_v29, %v632_v2  ;;  %v2356_v62 = vld [vmem:[#allocation35_spill] sm:$0xff]  ;;  %v2362_v30 = vld [vmem:[#allocation12_spill] sm:$0xff] }
  0xc4   :  { %v648_v44 = vadd.f32 %v2349_v33, %v2344_v18  ;;  %v2355_v23 = vsel %vm2352_vm12, %v2353_v20, %v2354_v7  ;;  %v683_v16 = vadd.f32 %v637_v63, %v633_v12  ;;  %v623_v35 = vmul.f32 0.6931472, %v862_v40  ;;  %v2357_v5 = vld [vmem:[#allocation83_spill] sm:$0xff]  ;;  %v2359_v10 = vld [vmem:[#allocation81_spill] sm:$0xff]  ;;  %v2363_v54 = vld [vmem:[#allocation84_spill] sm:$0xff] }
  0xc5   :  { %v649_v26 = vadd.f32 %v2355_v23, %v2350_v58  ;;  %vm2358_vm13 = vnez %v2357_v5  ;;  %v2360_v9 = vld [vmem:[#allocation47_spill] sm:$0xff]  ;;  %vm2364_vm15 = vnez %v2363_v54  ;;  %v663_v22 = vadd.f32 %v662_v19, %v638_v24  ;;  %v2366_v56 = vld [vmem:[#allocation13_spill] sm:$0xff]  ;;  %v2367_v63 = vld [vmem:[#allocation14_spill] sm:$0xff] }
  0xc6   :  { %v2361_v43 = vsel %vm2358_vm13, %v2359_v10, %v2360_v9  ;;  %v2365_v15 = vsel %vm2364_vm15, %v1702_v37, %v1738_v45  ;;  %v652_v52 = vadd.f32 %v548_v38, %v2366_v56  ;;  %v670_v2 = vadd.f32 %v669_v36, %v639_v60  ;;  %v2368_v40 = vld [vmem:[#allocation36_spill] sm:$0xff]  ;;  %v2369_v60 = vld [vmem:[#allocation11_spill] sm:$0xff]  ;;  %v2375_v21 = vld [vmem:[#allocation42_spill] sm:$0xff] }
  0xc7   :  { %v650_v8 = vadd.f32 %v2361_v43, %v2356_v62  ;;  %v651_v6 = vadd.f32 %v2365_v15, %v2362_v30  ;;  %v677_v12 = vadd.f32 %v676_v1, %v640_v27  ;;  %v684_v3 = vadd.f32 %v683_v16, %v641_v39  ;;  %v2370_v39 = vld [vmem:[#allocation37_spill] sm:$0xff] }
  0xc8   :  { %v611_v29 = vsel %vm1817_vm14, %v1815_v32, %v605_v61  ;;  %v653_v34 = vadd.f32 %v557_v25, %v2367_v63  ;;  %v654_v18 = vadd.f32 %v566_v49, %v2368_v40  ;;  %v664_v53 = vadd.f32 %v663_v22, %v642_v47  ;;  %v2371_v32 = vld [vmem:[#allocation38_spill] sm:$0xff]  ;;  %v2372_v47 = vld [vmem:[#allocation39_spill] sm:$0xff] }
  0xc9   :  { %v620_v55 = vsel %vm1828_vm8, %v617_v17, %v614_v50  ;;  %v671_v37 = vadd.f32 %v670_v2, %v643_v57  ;;  %v678_v45 = vadd.f32 %v677_v12, %v644_v59  ;;  %v685_v24 = vadd.f32 %v684_v3, %v645_v31  ;;  %v2374_v57 = vld [vmem:[#allocation41_spill] sm:$0xff] }
  0xca   :  { %v629_v38 = vsel %vm1842_vm0, %v626_v41, %v623_v35  ;;  %v655_v27 = vadd.f32 %v575_v51, %v2369_v60  ;;  %v656_v11 = vadd.f32 %v584_v42, %v2370_v39  ;;  %v665_v46 = vadd.f32 %v664_v53, %v646_v13 }
  0xcb   :  { %v657_v61 = vadd.f32 %v593_v28, %v2371_v32  ;;  %v672_v25 = vadd.f32 %v671_v37, %v647_v48  ;;  %v679_v33 = vadd.f32 %v678_v45, %v648_v44  ;;  %v686_v49 = vadd.f32 %v685_v24, %v649_v26 }
  0xcc   :  { %v658_v58 = vadd.f32 %v602_v4, %v2372_v47  ;;  %v659_v17 = vadd.f32 %v611_v29, %v2373_v14  ;;  %v660_v59 = vadd.f32 %v620_v55, %v2374_v57  ;;  %v666_v31 = vadd.f32 %v665_v46, %v650_v8 }
  0xcd   :  { %v661_v0 = vadd.f32 %v629_v38, %v2375_v21  ;;  %v673_v41 = vadd.f32 %v672_v25, %v651_v6  ;;  %v680_v20 = vadd.f32 %v679_v33, %v652_v52  ;;  %v687_v51 = vadd.f32 %v686_v49, %v653_v34 }
  0xce   :  { %v667_v7 = vadd.f32 %v666_v31, %v654_v18 }
  0xcf   :  { %v674_v42 = vadd.f32 %v673_v41, %v655_v27  ;;  %v681_v28 = vadd.f32 %v680_v20, %v656_v11  ;;  %v688_v13 = vadd.f32 %v687_v51, %v657_v61 }
  0xd0   :  { %v668_v48 = vadd.f32 %v667_v7, %v658_v58 }
  0xd1   :  { %v675_v44 = vadd.f32 %v674_v42, %v659_v17  ;;  %v682_v23 = vadd.f32 %v681_v28, %v660_v59  ;;  %v689_v4 = vadd.f32 %v688_v13, %v661_v0 }
  0xd2   :  { %694 = vst [vmem:[#allocation7] sm:$0xff] %v668_v48 }
  0xd3   :  { %695 = vst [vmem:[#allocation7 + $0x8] sm:$0xff] %v675_v44  ;;  %696 = vst [vmem:[#allocation7 + $0x10] sm:$0xff] %v682_v23 }
  0xd4   :  { %697 = vst [vmem:[#allocation7 + $0x18] sm:$0xff] %v689_v4 }
  0xd5   :  { %918 = shalt.err (!%p915_p6)
}
  0xd6   :  { %s919_s10 = scalar_lea.hbm %s2005_s2, 512 }
  0xd7   :  { %p920_p7 = scmp.ne.s32.totalorder %s2005_s2, %s919_s10  ;;  %p923_p8 = scmp.lt.u32.totalorder %s919_s10, %s2005_s2 }
  0xd9   :  { %p925_p9 = pnand %p923_p8, %p920_p7 }
  0xdb   :  { %928 = shalt.err (!%p925_p9)
}
  0xdc   :  { %723 = dma.vmem_to_hbm [thread:$0]  %s721_s6, 512, %s2005_s2, [#allocation4]  }
  0xdd   :  { %933 = dma.done.wait [#allocation4], 512  }
  0xde   :  { %934 = vsyncadd [#allocation4], 4294966784 }
  0xdf   :  { %727 = vsyncpa [#allocation3], 1 }
  0xe0   :  { %728 = vsyncpa [#allocation6], 1 }
  0xe1   :  { %729 = vsyncpa [#allocation4], 1 }

</bundles_post_ra>
